<compile_context>
chip_gen: v7x
topology: tpu7x:2x2x1
jax: 0.10.0
libtpu: 0.0.40
codegen_flags: <defaults>
</compile_context>

<pallas_src>
import functools

import jax
import jax.numpy as jnp
from jax.experimental import pallas as pl
from jax.experimental.pallas import tpu as pltpu


_LANE = 128
_POOL_CHUNK = 512                       # lanes per pool-reduction chunk (keeps vregs bounded)
_VMEM_LIMIT_BYTES = 48 * 1024 * 1024    # requested scoped VMEM (< v7x 64 MiB physical)
_VMEM_BUDGET_BYTES = 30 * 1024 * 1024   # what block sizing is budgeted against (headroom)
_TILE_MAX_BYTES = 4 * 1024 * 1024       # per-block cap for the tiled fallback


# ----------------------------- in-kernel helpers -----------------------------

def _pool_sum_f32(x_ref):
    """Sum an x block of shape (1, C, L) over the lane (spatial) axis in f32.

    Reduces in <=512-lane chunks straight from the ref so a large low-precision
    tile is never upcast to f32 wholesale (keeps live vregs under control).
    """
    _, c, l = x_ref.shape
    if l <= _POOL_CHUNK:
        return jnp.sum(x_ref[0].astype(jnp.float32), axis=-1, keepdims=True)
    acc = None
    start = 0
    while start < l:                    # static trace-time loop over chunks
        end = min(start + _POOL_CHUNK, l)
        part = jnp.sum(x_ref[0, :, start:end].astype(jnp.float32),
                       axis=-1, keepdims=True)
        acc = part if acc is None else acc + part
        start = end
    return acc


def _gate_from_mean(s_col, w1t_ref, sh1_ref, w2_ref, sh2_ref):
    """Channel means (C,1) f32 -> SE gate (C,1) f32.

    BN scales are pre-folded into the weights; only the shift adds remain.
    Computed as broadcast-multiply + sublane/lane reductions (VPU + XLU), so
    no padded MXU matvec ever hits the critical path.
      w1t: (C, Cr)   sh1: (1, Cr)   w2: (C, Cr)   sh2: (C, 1)
    """
    h = jnp.sum(s_col * w1t_ref[...], axis=0, keepdims=True) + sh1_ref[...]   # (1, Cr)
    h = jnp.maximum(h, 0.0)
    y = jnp.sum(w2_ref[...] * h, axis=1, keepdims=True) + sh2_ref[...]        # (C, 1)
    return jnp.clip(y + 3.0, 0.0, 6.0) * (1.0 / 6.0)                          # hsigmoid


# --------------------------------- kernels -----------------------------------

def _fused_kernel(x_ref, w1t_ref, sh1_ref, w2_ref, sh2_ref, o_ref, *, inv_hw):
    """Pool + gate + apply for one batch slice, fully resident in VMEM."""
    s = _pool_sum_f32(x_ref) * inv_hw                                         # (C, 1) f32
    g = _gate_from_mean(s, w1t_ref, sh1_ref, w2_ref, sh2_ref)                 # (C, 1) f32
    # Cast the tiny gate to x's dtype instead of upcasting the big tile.
    o_ref[0] = x_ref[0] * g.astype(o_ref.dtype)


def _pool_gate_kernel(x_ref, w1t_ref, sh1_ref, w2_ref, sh2_ref, g_ref, *, inv_hw):
    """Tiled spatial pool; gate FCs fused into the last-tile epilogue.

    g_ref block (1, C, 1) f32 stays resident across the spatial reduction axis
    (axis 1 of the grid, 'arbitrary'); it holds the running sum until the last
    tile, where it is converted in place into the final gate.
    """
    t = pl.program_id(1)

    @pl.when(t == 0)
    def _():
        g_ref[...] = jnp.zeros_like(g_ref)

    g_ref[0] += _pool_sum_f32(x_ref)

    @pl.when(t == pl.num_programs(1) - 1)
    def _():
        g_ref[0] = _gate_from_mean(g_ref[0] * inv_hw,
                                   w1t_ref, sh1_ref, w2_ref, sh2_ref)


def _apply_kernel(x_ref, g_ref, o_ref):
    """Elementwise x * gate, streaming over lane-dense spatial tiles."""
    o_ref[0] = x_ref[0] * g_ref[0].astype(o_ref.dtype)


# --------------------------------- wrapper -----------------------------------

def _choose_hw_tile(hw, c, dtype_bytes):
    """Largest multiple of 128 lanes that divides HW exactly and keeps the
    (1, C, tile) block under ~_TILE_MAX_BYTES (4x double-buffered blocks stay
    inside the cross-generation VMEM budget). Falls back to the full extent
    (always a legal block) if HW is not 128-tileable."""
    if hw % _LANE != 0:
        return hw
    per_lane = max(1, c * dtype_bytes)
    cap = max(_LANE, (_TILE_MAX_BYTES // per_lane) // _LANE * _LANE)
    best = None
    t = _LANE
    while t <= min(hw, cap):
        if hw % t == 0:
            best = t
        t += _LANE
    return best if best is not None else hw


def se_module_pallas(x_nchw, w1, bn1, w2, bn2, eps=1e-5, *,
                     force_tiled=False, hw_tile=None):
    """x_nchw: (N, C, H, W).  w1: (Cr, C) (out,in), w2: (C, Cr) (out,in).
    bn1/bn2: dicts with gamma, beta, mean, var (per-channel). Inference mode."""
    N, C, H, W = x_nchw.shape
    Cr = w1.shape[0]
    HW = H * W
    dsize = x_nchw.dtype.itemsize

    # NCHW with spatial flattened -- a free reshape, no transpose.
    x3 = x_nchw.reshape(N, C, HW)

    # Fold BN (inference) into scale/shift, then fold scales into the weights.
    def fold(bn):
        scale = bn["gamma"] / jnp.sqrt(bn["var"] + eps)
        shift = bn["beta"] - bn["mean"] * scale
        return scale, shift

    sc1, sh1 = fold(bn1)                                  # (Cr,)
    sc2, sh2 = fold(bn2)                                  # (C,)
    w1t = (w1 * sc1[:, None]).T.astype(jnp.float32)       # (C, Cr)
    sh1_r = sh1.reshape(1, Cr).astype(jnp.float32)        # (1, Cr)
    w2m = (w2 * sc2[:, None]).astype(jnp.float32)         # (C, Cr)
    sh2_c = sh2.reshape(C, 1).astype(jnp.float32)         # (C, 1)

    inv_hw = float(1.0 / HW)
    weight_bytes = (2 * C * Cr + Cr + C) * 4

    # Fit check for the fully-fused path: in + out double-buffered slices plus
    # the (tiny) resident weights must stay inside the conservative budget that
    # holds on v7x (64 MiB physical) as well as v5e/v6e.
    slice_bytes = C * HW * dsize
    fused_fits = (4 * slice_bytes + 2 * weight_bytes) <= _VMEM_BUDGET_BYTES

    if fused_fits and not force_tiled:
        # ---- Single fused call: pool + gate + apply, grid over batch only ----
        out3 = pl.pallas_call(
            functools.partial(_fused_kernel, inv_hw=inv_hw),
            out_shape=jax.ShapeDtypeStruct((N, C, HW), x_nchw.dtype),
            grid_spec=pltpu.PrefetchScalarGridSpec(
                num_scalar_prefetch=0,
                grid=(N,),
                in_specs=[
                    pl.BlockSpec((1, C, HW), lambda n: (n, 0, 0)),
                    pl.BlockSpec((C, Cr), lambda n: (0, 0)),
                    pl.BlockSpec((1, Cr), lambda n: (0, 0)),
                    pl.BlockSpec((C, Cr), lambda n: (0, 0)),
                    pl.BlockSpec((C, 1), lambda n: (0, 0)),
                ],
                out_specs=pl.BlockSpec((1, C, HW), lambda n: (n, 0, 0)),
            ),
            compiler_params=pltpu.CompilerParams(
                dimension_semantics=("parallel",),
                vmem_limit_bytes=_VMEM_LIMIT_BYTES),
        )(x3, w1t, sh1_r, w2m, sh2_c)
        return out3.reshape(N, C, H, W)

    # ---- Tiled fallback: pass 1 = pool + gate (fused epilogue), pass 2 = apply ----
    tile = hw_tile if hw_tile is not None else _choose_hw_tile(HW, C, dsize)
    if tile != HW:
        assert tile % _LANE == 0 and HW % tile == 0, (
            "spatial tile must be a multiple of 128 and divide HW exactly")
    num_t = HW // tile

    gate = pl.pallas_call(
        functools.partial(_pool_gate_kernel, inv_hw=inv_hw),
        out_shape=jax.ShapeDtypeStruct((N, C, 1), jnp.float32),
        grid_spec=pltpu.PrefetchScalarGridSpec(
            num_scalar_prefetch=0,
            grid=(N, num_t),
            in_specs=[
                pl.BlockSpec((1, C, tile), lambda n, t: (n, 0, t)),
                pl.BlockSpec((C, Cr), lambda n, t: (0, 0)),
                pl.BlockSpec((1, Cr), lambda n, t: (0, 0)),
                pl.BlockSpec((C, Cr), lambda n, t: (0, 0)),
                pl.BlockSpec((C, 1), lambda n, t: (0, 0)),
            ],
            out_specs=pl.BlockSpec((1, C, 1), lambda n, t: (n, 0, 0)),
        ),
        compiler_params=pltpu.CompilerParams(
            dimension_semantics=("parallel", "arbitrary"),
            vmem_limit_bytes=_VMEM_LIMIT_BYTES),
    )(x3, w1t, sh1_r, w2m, sh2_c)

    out3 = pl.pallas_call(
        _apply_kernel,
        out_shape=jax.ShapeDtypeStruct((N, C, HW), x_nchw.dtype),
        grid_spec=pltpu.PrefetchScalarGridSpec(
            num_scalar_prefetch=0,
            grid=(N, num_t),
            in_specs=[
                pl.BlockSpec((1, C, tile), lambda n, t: (n, 0, t)),
                pl.BlockSpec((1, C, 1), lambda n, t: (n, 0, 0)),
            ],
            out_specs=pl.BlockSpec((1, C, tile), lambda n, t: (n, 0, t)),
        ),
        compiler_params=pltpu.CompilerParams(
            dimension_semantics=("parallel", "parallel"),
            vmem_limit_bytes=_VMEM_LIMIT_BYTES),
    )(x3, gate)

    return out3.reshape(N, C, H, W)


# ------------------------------- pure-JAX ref ---------------------------------

def se_module_ref(x_nchw, w1, bn1, w2, bn2, eps=1e-5):
    """Pure-JAX reference mirroring the PyTorch module (eval mode)."""
    s = jnp.mean(x_nchw, axis=(2, 3))                       # (N, C)
    h = s @ w1.T
    h = (h - bn1["mean"]) / jnp.sqrt(bn1["var"] + eps) * bn1["gamma"] + bn1["beta"]
    h = jnp.maximum(h, 0.0)
    y = h @ w2.T
    y = (y - bn2["mean"]) / jnp.sqrt(bn2["var"] + eps) * bn2["gamma"] + bn2["beta"]
    gate = jnp.clip(y + 3.0, 0.0, 6.0) / 6.0                # (N, C)
    return x_nchw * gate[:, :, None, None]


# ----------------------------------- main -------------------------------------

if __name__ == "__main__":
    root = jax.random.PRNGKey(0)

    def make_inputs(key, N, C, H, W, reduction=4):
        Cr = C // reduction
        ks = jax.random.split(key, 11)
        x = jax.random.normal(ks[0], (N, C, H, W), dtype=jnp.float32)
        w1 = jax.random.normal(ks[1], (Cr, C), dtype=jnp.float32) * 0.1
        w2 = jax.random.normal(ks[2], (C, Cr), dtype=jnp.float32) * 0.1
        bn1 = dict(
            gamma=1.0 + 0.1 * jax.random.normal(ks[3], (Cr,), dtype=jnp.float32),
            beta=0.1 * jax.random.normal(ks[4], (Cr,), dtype=jnp.float32),
            mean=0.1 * jax.random.normal(ks[5], (Cr,), dtype=jnp.float32),
            var=1.0 + 0.1 * jax.random.uniform(ks[6], (Cr,), dtype=jnp.float32),
        )
        bn2 = dict(
            gamma=1.0 + 0.1 * jax.random.normal(ks[7], (C,), dtype=jnp.float32),
            beta=0.1 * jax.random.normal(ks[8], (C,), dtype=jnp.float32),
            mean=0.1 * jax.random.normal(ks[9], (C,), dtype=jnp.float32),
            var=1.0 + 0.1 * jax.random.uniform(ks[10], (C,), dtype=jnp.float32),
        )
        return x, w1, bn1, w2, bn2

    k1, k2 = jax.random.split(root)

    # 1) Small SE block -> fully-fused single-kernel path.
    x, w1, bn1, w2, bn2 = make_inputs(k1, 2, 16, 16, 16)
    out = jax.block_until_ready(se_module_pallas(x, w1, bn1, w2, bn2))
    ref = se_module_ref(x, w1, bn1, w2, bn2)
    assert out.shape == x.shape
    assert jnp.allclose(out, ref, atol=1e-5, rtol=1e-5), "fused path mismatch"

    # 2) Larger spatial extent -> fused path with chunked pool reduction.
    x2, w1b, bn1b, w2b, bn2b = make_inputs(k2, 1, 24, 32, 32)
    out2 = jax.block_until_ready(se_module_pallas(x2, w1b, bn1b, w2b, bn2b))
    ref2 = se_module_ref(x2, w1b, bn1b, w2b, bn2b)
    assert jnp.allclose(out2, ref2, atol=1e-5, rtol=1e-5), "chunked fused mismatch"

    # 3) Same data through the tiled two-pass fallback (pool+gate epilogue, apply).
    out3 = jax.block_until_ready(
        se_module_pallas(x2, w1b, bn1b, w2b, bn2b, force_tiled=True, hw_tile=128))
    assert jnp.allclose(out3, ref2, atol=1e-5, rtol=1e-5), "tiled path mismatch"

    print("KERNEL_OK")
</pallas_src>

<mosaic_0001>
module attributes {stable_mosaic.version = 11 : i64} {
  func.func @_fused_kernel(%arg0: i32, %arg1: memref<1x16x256xf32, #tpu.memory_space<vmem>>, %arg2: memref<16x4xf32, #tpu.memory_space<vmem>>, %arg3: memref<1x4xf32, #tpu.memory_space<vmem>>, %arg4: memref<16x4xf32, #tpu.memory_space<vmem>>, %arg5: memref<16x1xf32, #tpu.memory_space<vmem>>, %arg6: memref<1x16x256xf32, #tpu.memory_space<vmem>>) attributes {dimension_semantics = [#tpu.dimension_semantics<parallel>], iteration_bounds = array<i64: 2>, scalar_prefetch = 0 : i64, scratch_operands = 0 : i64, tpu.core_type = #tpu.core_type<tc>, window_params = [{transform_indices = @transform_0, window_bounds = array<i64: 1, 16, 256>}, {pipeline_mode = #tpu.pipeline_mode<synchronous>, transform_indices = @transform_1, window_bounds = array<i64: 16, 4>}, {pipeline_mode = #tpu.pipeline_mode<synchronous>, transform_indices = @transform_2, window_bounds = array<i64: 1, 4>}, {pipeline_mode = #tpu.pipeline_mode<synchronous>, transform_indices = @transform_3, window_bounds = array<i64: 16, 4>}, {pipeline_mode = #tpu.pipeline_mode<synchronous>, transform_indices = @transform_4, window_bounds = array<i64: 16, 1>}, {transform_indices = @transform_5, window_bounds = array<i64: 1, 16, 256>}]} {
    %c0 = arith.constant 0 : index
    %c0_0 = arith.constant 0 : index
    %c0_1 = arith.constant 0 : index
    %0 = vector.load %arg1[%c0, %c0_0, %c0_1] : memref<1x16x256xf32, #tpu.memory_space<vmem>>, vector<1x16x256xf32>
    %1 = vector.shape_cast %0 : vector<1x16x256xf32> to vector<16x256xf32>
    %cst = arith.constant dense<0.000000e+00> : vector<16xf32>
    %2 = vector.multi_reduction <add>, %1, %cst [1] : vector<16x256xf32> to vector<16xf32>
    %3 = vector.shape_cast %2 : vector<16xf32> to vector<16x1xf32>
    %cst_2 = arith.constant 3.906250e-03 : f32
    %4 = vector.broadcast %cst_2 : f32 to vector<16x1xf32>
    %5 = arith.mulf %3, %4 : vector<16x1xf32>
    %c0_3 = arith.constant 0 : index
    %c0_4 = arith.constant 0 : index
    %6 = vector.load %arg2[%c0_3, %c0_4] : memref<16x4xf32, #tpu.memory_space<vmem>>, vector<16x4xf32>
    %7 = vector.broadcast %5 : vector<16x1xf32> to vector<16x4xf32>
    %8 = arith.mulf %7, %6 : vector<16x4xf32>
    %cst_5 = arith.constant dense<0.000000e+00> : vector<4xf32>
    %9 = vector.multi_reduction <add>, %8, %cst_5 [0] : vector<16x4xf32> to vector<4xf32>
    %10 = vector.shape_cast %9 : vector<4xf32> to vector<1x4xf32>
    %c0_6 = arith.constant 0 : index
    %c0_7 = arith.constant 0 : index
    %11 = vector.load %arg3[%c0_6, %c0_7] : memref<1x4xf32, #tpu.memory_space<vmem>>, vector<1x4xf32>
    %12 = arith.addf %10, %11 : vector<1x4xf32>
    %cst_8 = arith.constant 0.000000e+00 : f32
    %13 = vector.broadcast %cst_8 : f32 to vector<1x4xf32>
    %14 = arith.maximumf %12, %13 : vector<1x4xf32>
    %c0_9 = arith.constant 0 : index
    %c0_10 = arith.constant 0 : index
    %15 = vector.load %arg4[%c0_9, %c0_10] : memref<16x4xf32, #tpu.memory_space<vmem>>, vector<16x4xf32>
    %16 = vector.broadcast %14 : vector<1x4xf32> to vector<16x4xf32>
    %17 = arith.mulf %15, %16 : vector<16x4xf32>
    %cst_11 = arith.constant dense<0.000000e+00> : vector<16xf32>
    %18 = vector.multi_reduction <add>, %17, %cst_11 [1] : vector<16x4xf32> to vector<16xf32>
    %19 = vector.shape_cast %18 : vector<16xf32> to vector<16x1xf32>
    %c0_12 = arith.constant 0 : index
    %c0_13 = arith.constant 0 : index
    %20 = vector.load %arg5[%c0_12, %c0_13] : memref<16x1xf32, #tpu.memory_space<vmem>>, vector<16x1xf32>
    %21 = arith.addf %19, %20 : vector<16x1xf32>
    %cst_14 = arith.constant 3.000000e+00 : f32
    %22 = vector.broadcast %cst_14 : f32 to vector<16x1xf32>
    %23 = arith.addf %21, %22 : vector<16x1xf32>
    %cst_15 = arith.constant 0.000000e+00 : f32
    %cst_16 = arith.constant 6.000000e+00 : f32
    %24 = vector.broadcast %cst_15 : f32 to vector<16x1xf32>
    %25 = arith.maximumf %24, %23 : vector<16x1xf32>
    %26 = vector.broadcast %cst_16 : f32 to vector<16x1xf32>
    %27 = arith.minimumf %26, %25 : vector<16x1xf32>
    %cst_17 = arith.constant 0.166666672 : f32
    %28 = vector.broadcast %cst_17 : f32 to vector<16x1xf32>
    %29 = arith.mulf %27, %28 : vector<16x1xf32>
    %c0_18 = arith.constant 0 : index
    %c0_19 = arith.constant 0 : index
    %c0_20 = arith.constant 0 : index
    %30 = vector.load %arg1[%c0_18, %c0_19, %c0_20] : memref<1x16x256xf32, #tpu.memory_space<vmem>>, vector<1x16x256xf32>
    %31 = vector.shape_cast %30 : vector<1x16x256xf32> to vector<16x256xf32>
    %32 = vector.broadcast %29 : vector<16x1xf32> to vector<16x256xf32>
    %33 = arith.mulf %31, %32 : vector<16x256xf32>
    %c0_21 = arith.constant 0 : index
    %c0_22 = arith.constant 0 : index
    %c0_23 = arith.constant 0 : index
    %34 = vector.load %arg6[%c0_21, %c0_22, %c0_23] : memref<1x16x256xf32, #tpu.memory_space<vmem>>, vector<1x16x256xf32>
    %35 = vector.shape_cast %34 : vector<1x16x256xf32> to vector<16x256xf32>
    %36 = vector.shape_cast %33 : vector<16x256xf32> to vector<1x16x256xf32>
    tpu.vector_store %arg6[%c0_21, %c0_22, %c0_23], %36 {strides = array<i32>} : memref<1x16x256xf32, #tpu.memory_space<vmem>>, vector<1x16x256xf32>,
    return
  }
  func.func @transform_0(%arg0: i32) -> (i32, i32, i32) {
    %c0_i32 = arith.constant 0 : i32
    %c0_i32_0 = arith.constant 0 : i32
    %c0_i32_1 = arith.constant 0 : i32
    return %arg0, %c0_i32, %c0_i32_0 : i32, i32, i32
  }
  func.func @transform_1(%arg0: i32) -> (i32, i32) {
    %c0_i32 = arith.constant 0 : i32
    %c0_i32_0 = arith.constant 0 : i32
    %c0_i32_1 = arith.constant 0 : i32
    return %c0_i32, %c0_i32_0 : i32, i32
  }
  func.func @transform_2(%arg0: i32) -> (i32, i32) {
    %c0_i32 = arith.constant 0 : i32
    %c0_i32_0 = arith.constant 0 : i32
    %c0_i32_1 = arith.constant 0 : i32
    return %c0_i32, %c0_i32_0 : i32, i32
  }
  func.func @transform_3(%arg0: i32) -> (i32, i32) {
    %c0_i32 = arith.constant 0 : i32
    %c0_i32_0 = arith.constant 0 : i32
    %c0_i32_1 = arith.constant 0 : i32
    return %c0_i32, %c0_i32_0 : i32, i32
  }
  func.func @transform_4(%arg0: i32) -> (i32, i32) {
    %c0_i32 = arith.constant 0 : i32
    %c0_i32_0 = arith.constant 0 : i32
    %c0_i32_1 = arith.constant 0 : i32
    return %c0_i32, %c0_i32_0 : i32, i32
  }
  func.func @transform_5(%arg0: i32) -> (i32, i32, i32) {
    %c0_i32 = arith.constant 0 : i32
    %c0_i32_0 = arith.constant 0 : i32
    %c0_i32_1 = arith.constant 0 : i32
    return %arg0, %c0_i32, %c0_i32_0 : i32, i32, i32
  }
}

</mosaic_0001>

<bundles_post_ra>
// kernel: tpu_custom_call.1
= control target key start
LH: loop header
LB: loop body
LE: loop exit
PB: predicated region body
PF: predicated region fallthrough
CT: control target
= control target key end

     0   :  { %10 = vsyncpa [#allocation3], 0  ;;  %s814_s0 = inlined_call_operand.hbm [shape: f32[2,16,256], index: 0, kind: input, shape index: {}]   ;;  %s815_s1 = inlined_call_operand.vmem [shape: f32[16,4], index: 1, kind: input, shape index: {}]   ;;  %s816_s2 = inlined_call_operand.vmem [shape: f32[1,4], index: 2, kind: input, shape index: {}]   ;;  %s817_s3 = inlined_call_operand.vmem [shape: f32[16,4], index: 3, kind: input, shape index: {}]   ;;  %s818_s4 = inlined_call_operand.vmem [shape: f32[16,1], index: 4, kind: input, shape index: {}]   ;;  %s819_s5 = inlined_call_operand.hbm [shape: f32[2,16,256], index: 5, kind: output, shape index: {}]  }
   0x1   :  { %12 = vsyncpa [#allocation3 + $0x1], 0 }
   0x2   :  { %13 = vsyncpa [#allocation4], 0 }
   0x3   :  { %15 = vsyncpa [#allocation4 + $0x1], 0  ;;  %s607_s18 = smov 0   ;;  %s609_s19 = smov 0  }
   0x4   :  { %s611_s20 = smov 0   ;;  %s613_s21 = smov 0  }
   0x5 LB: > { %s628_s22 = sadd.s32 4294967295, %s568_s21   ;;  %s403_s23 = sadd.s32 4294967294, %s568_s21   ;;  %s568_s21 = sphi %s613_s21, %s832_s21   ;;  %s564_s20 = sphi %s611_s20, %s831_s20   ;;  %s560_s19 = sphi %s609_s19, %s830_s19   ;;  %s556_s18 = sphi %s607_s18, %s829_s18  }
   0x6   : > { %s632_s24 = sadd.s32 1, %s568_s21   ;;  %s28_s25 = sadd.s32 1, %s564_s20 }
   0x7   : > { %s25_s26 = ssub.s32 %s568_s21, %s632_s24  ;;  %p35_p0 = scmp.ne.s32.totalorder %s564_s20, %s560_s19 }
   0x8   : > { %p26_p1 = scmp.eq.s32.totalorder %s25_s26, 0  ;;  %p36_p2 = scmp.eq.s32.totalorder %s568_s21, 0 }
   0x9   : > { %p41_p3 = scmp.ne.s32.totalorder %s560_s19, %s556_s18  ;;  %p42_p4 = scmp.eq.s32.totalorder %s628_s22, 0 }
   0xa   : > { %s644_s27 = scalar_select %p26_p1, %s564_s20, %s28_s25  }
   0xb   : > { %p646_p5 = por %p36_p2, %p35_p0  ;;  %p650_p6 = por %p42_p4, %p41_p3 }
   0xc   : > { %p149_p7 = scmp.eq.s32.totalorder %s628_s22, 1  ;;  %p155_p8 = scmp.eq.s32.totalorder %s403_s23, 1 }
   0xd   : > { %p431_p10 = scmp.lt.s32.totalorder %s568_s21, 2  ;;  %s187_s7 = sand.u32 1, %s564_s20  }
   0xe   : > { %p657_p11 = por %p149_p7, %p35_p0  ;;  %p661_p12 = por %p155_p8, %p41_p3 }
   0xf   : > { %s417_s8 = sshll.u32 %s568_s21, 9  ;;  %s406_s9 = sshll.u32 %s187_s7, 5 }
  0x10   : > { %s823_s30 = scalar_select %p657_p11, 1, 0 }
  0x11   : > { %s824_s6 = scalar_select %p661_p12, 1, 0 }
  0x12   : > { %s670_s12 = scalar_lea.hbm %s814_s0, %s417_s8  ;;  %s191_s13 = scalar_lea.vmem [#allocation2], %s406_s9 }
  0x13   : > { %s198_s14 = sshll.u32 %s191_s13, 4  ;;  %p674_p13 = pnand %p431_p10, %p646_p5  ;;  %s678_s14 = int_to_ptr.vmem [resolvable:$true] %s198_s14 }
  0x14   : > { %s680_s16 = scalar_lea.sflag [#allocation3], %s187_s7  ;;  %s472_s17 = scalar_lea.hbm %s670_s12, 512 }
  0x15   : > { %p473_p0 = scmp.ne.s32.totalorder %s670_s12, %s472_s17  ;;  %p474_p1 = pneg %p674_p13 }
  0x16   : > { %s477_s26 = scalar_lea.hbm %s814_s0, 1024  ;;  %p478_p4 = scmp.lt.u32.totalorder %s670_s12, %s814_s0 }
  0x17   : > { %p475_p2 = pnand %p474_p1, %p473_p0  ;;  %p479_p5 = scmp.lt.u32.totalorder %s477_s26, %s472_s17 }
  0x18   : > { %p481_p8 = scmp.lt.u32.totalorder %s472_s17, %s670_s12 }
  0x19   : > { %p476_p3 = pneg %p475_p2  ;;  %p480_p7 = por %p479_p5, %p478_p4 }
  0x1b   : > { %p482_p10 = por %p481_p8, %p480_p7 }
  0x1d   : > { %p483_p9 = pnand %p482_p10, %p476_p3 }
  0x1f   : > { %486 = shalt.err (!%p483_p9)
}
  0x20   : > { %s487_s7 = scalar_lea.vmem %s678_s14, 512  ;;  %s570_s9 = smov [#allocation2]  }
  0x21   : > { %p488_p0 = scmp.ne.s32.totalorder %s678_s14, %s487_s7  ;;  %s492_s10 = sshll.u32 %s570_s9, 4  ;;  %s493_s10 = int_to_ptr.vmem [resolvable:$false] %s492_s10 }
  0x22   : > { %s494_s11 = scalar_lea.vmem %s493_s10, 1024  ;;  %p495_p11 = scmp.lt.s32.totalorder %s678_s14, %s493_s10 }
  0x23   : > { %p490_p2 = pnand %p488_p0, %p474_p1  ;;  %p496_p4 = scmp.lt.s32.totalorder %s494_s11, %s487_s7 }
  0x25   : > { %p491_p12 = pneg %p490_p2  ;;  %p497_p5 = por %p496_p4, %p495_p11 }
  0x27   : > { %p498_p7 = pnand %p497_p5, %p491_p12 }
  0x29   : > { %501 = shalt.err (!%p498_p7)
}
  0x2a   : > { %s571_s13 = smov 256   ;;  %s572_s17 = smov 16  }
  0x2b   : > { %426 = dma.hbm_to_vmem [thread:$0]  (!%p674_p13), %s670_s12, 512, %s678_s14, %s680_s16, %s571_s13, %s571_s13, %s572_s17  }
  0x2c   : > { %p409_p9 = scmp.ge.s32.totalorder %s568_s21, 1  ;;  %p206_p1 = scmp.lt.s32.totalorder %s568_s21, 3 }
  0x2e   : > { %p207_p3 = pnand %p409_p9, %p206_p1 }
  0x2f   : > { %s711_s23 = sand.u32 (!%p207_p3), 1, %s560_s19  }
  0x30   : > { %210 = sbr.rel (%p207_p3) target bundleno = 534 (0x216), region = 40  ;;  %s410_s25 = sshll.u32 (!%p207_p3), %s711_s23, 5 }
  0x31   : > { %s213_s26 = scalar_lea.sflag (!%p207_p3), [#allocation3], %s711_s23  ;;  %s216_s28 = scalar_lea.vmem (!%p207_p3), [#allocation2], %s410_s25 }
  0x37   : > { %547 = dma.done.wait (%p650_p6), %s213_s26, 512  }
  0x38   : > { %549 = vsyncadd (%p650_p6), %s213_s26, 4294966784  ;;  %v721_v0 = vld [vmem:[%s216_s28] sm:$0xff]  ;;  %v723_v1 = vld [vmem:[%s216_s28 + $0x8] sm:$0xff]  ;;  %vm259_vm0 = vcmask 31744   ;;  %v274_v20 = vlaneseq  ;;  %v573_v36 = vmov 0   ;;  %s242_s29 = scalar_lea.vmem [#allocation5], %s410_s25 }
  0x39   : > { %v725_v2 = vld [vmem:[%s216_s28 + $0x10] sm:$0xff]  ;;  %v247_v3 = vadd.f32 %v723_v1, %v721_v0  ;;  %v729_v4 = vld [vmem:[%s216_s28 + $0x18] sm:$0xff]  ;;  %v255_v8 = vld [vmem:[%s815_s1] sm:$0xff]  ;;  %470 = vset.pattern.permute.xlu0 %v573_v36  ;;  %471 = vset.pattern.permute.xlu1 %v573_v36  ;;  %s330_s12 = sshll.u32 %s242_s29, 4  ;;  %s418_s14 = sshll.u32 %s628_s22, 9  ;;  %s763_s12 = int_to_ptr.vmem [resolvable:$true] %s330_s12 }
  0x3a   : > { %v250_v5 = vadd.f32 %v729_v4, %v725_v2  ;;  %v256_v9 = vld [vmem:[%s815_s1 + $0x8] sm:$0xff]  ;;  %v275_v23 = vshrl.u32 %v274_v20, 7  ;;  %v269_v24 = vld [vmem:[%s816_s2] sm:$0x1]  ;;  %s768_s25 = scalar_lea.hbm %s819_s5, %s418_s14  ;;  %s317_s22 = scalar_lea.sflag [#allocation4], %s711_s23 }
  0x3b   : > { %248 = vadd.xlane.f32.xlu0 %v247_v3  ;;  %v272_v29 = vld [vmem:[%s817_s3] sm:$0xff]  ;;  %v273_v31 = vld [vmem:[%s817_s3 + $0x8] sm:$0xff]  ;;  %s502_s8 = scalar_lea.vmem %s763_s12, 512  ;;  %p826_p11 = scmp.ne.s32.totalorder %s823_s30, 0 }
  0x3c   : > { %v276_v27 = vsub.s32 0, %v275_v23  ;;  %v286_v37 = vld [vmem:[%s818_s4] sm:$0xff]  ;;  %v287_v40 = vld [vmem:[%s818_s4 + $0x8] sm:$0xff]  ;;  %p503_p6 = scmp.ne.s32.totalorder %s763_s12, %s502_s8  ;;  %s574_s7 = smov [#allocation5]  }
  0x3d   : > { %s506_s9 = sshll.u32 %s574_s7, 4  ;;  %s507_s9 = int_to_ptr.vmem [resolvable:$false] %s506_s9 }
  0x3e   : > { %p504_p12 = pnand %p503_p6, %p826_p11  ;;  %s508_s10 = scalar_lea.vmem %s507_s9, 1024 }
  0x3f   : > { %251 = vadd.xlane.f32.xlu0 %v250_v5  ;;  %p509_p8 = scmp.lt.s32.totalorder %s763_s12, %s507_s9  ;;  %p510_p10 = scmp.lt.s32.totalorder %s508_s10, %s502_s8 }
  0x40   : > { %p505_p13 = pneg %p504_p12 }
  0x41   : > { %p511_p0 = por %p510_p10, %p509_p8 }
  0x43   : > { %p512_p2 = pnand %p511_p0, %p505_p13 }
  0xc8   : > { %v249_v6 = vpop.xlane.xlu0 %248 }
  0xc9   : > { %v253_v7 = vmul.f32 0.00390625, %v249_v6 }
  0xcb   : > { %v257_v11 = vmul.f32 %v255_v8, %v253_v7 }
  0xcc   : > { %v252_v10 = vpop.xlane.xlu0 %251 }
  0xcd   : > { %v254_v12 = vmul.f32 0.00390625, %v252_v10  ;;  %v260_v14 = vsel %vm259_vm0, %v257_v11, 0.0 }
  0xcf   : > { %v258_v13 = vmul.f32 %v256_v9, %v254_v12 }
  0xd1   : > { %v261_v15 = vsel %vm259_vm0, %v258_v13, 0.0 }
  0xd2   : > { %v262_v16 = vadd.f32 %v261_v15, %v260_v14 }
  0xd4   : > { %v263_v17 = vrot.slane %v262_v16, 4 }
  0xd6   : > { %v264_v18 = vadd.f32 %v263_v17, %v262_v16 }
  0xd8   : > { %v265_v19 = vrot.slane %v264_v18, 2 }
  0xda   : > { %v266_v21 = vadd.f32 %v265_v19, %v264_v18 }
  0xdc   : > { %v267_v22 = vrot.slane %v266_v21, 1 }
  0xde   : > { %v268_v25 = vadd.f32 %v267_v22, %v266_v21 }
  0xe0   : > { %v270_v26 = vadd.f32 %v269_v24, %v268_v25 }
  0xe2   : > { %v271_v28 = vmax.f32 %v270_v26, 0.0 }
  0xe4   : > { %v277_v30 = vrot.slane %v271_v28, %v276_v27 }
  0xe6   : > { %v278_v32 = vmul.f32 %v277_v30, %v272_v29  ;;  %v279_v34 = vmul.f32 %v277_v30, %v273_v31 }
  0xe8   : > { %v280_v33 = vsel %vm259_vm0, %v278_v32, 0.0  ;;  %v283_v35 = vsel %vm259_vm0, %v279_v34, 0.0 }
  0xe9   : > { %281 = vadd.xlane.f32.xlu1 %v280_v33 }
  0xed   : > { %284 = vadd.xlane.f32.xlu1 %v283_v35 }
 0x176   : > { %v282_v38 = vpop.xlane.xlu1 %281 }
 0x177   : > { %v288_v39 = vadd.f32 %v286_v37, %v282_v38 }
 0x179   : > { %v290_v41 = vadd.f32 3.0, %v288_v39 }
 0x17a   : > { %v285_v42 = vpop.xlane.xlu1 %284 }
 0x17b   : > { %v292_v43 = vmax.f32 %v290_v41, 0.0  ;;  %v289_v44 = vadd.f32 %v287_v40, %v285_v42 }
 0x17d   : > { %v294_v45 = vmin.f32 %v292_v43, 6.0  ;;  %v291_v46 = vadd.f32 3.0, %v289_v44 }
 0x17f   : > { %v296_v47 = vmul.f32 0.16666667, %v294_v45  ;;  %v293_v48 = vmax.f32 %v291_v46, 0.0 }
 0x181   : > { %v295_v49 = vmin.f32 %v293_v48, 6.0  ;;  %300 = vperm.xlu0 %470, %v296_v47  }
 0x183   : > { %v297_v50 = vmul.f32 0.16666667, %v295_v49 }
 0x185   : > { %305 = vperm.xlu1 %471, %v297_v50  }
 0x200   : > { %v301_v51 = vpop.permute.xlu0 %300 }
 0x201   : > { %v308_v52 = vmul.f32 %v301_v51, %v721_v0  ;;  %v309_v53 = vmul.f32 %v301_v51, %v723_v1 }
 0x203   : > { %312 = vst [vmem:[%s242_s29] sm:$0xff] %v308_v52  ;;  %313 = vst [vmem:[%s242_s29 + $0x8] sm:$0xff] %v309_v53 }
 0x204   : > { %v306_v54 = vpop.permute.xlu1 %305 }
 0x205   : > { %v310_v55 = vmul.f32 %v306_v54, %v725_v2  ;;  %v311_v56 = vmul.f32 %v306_v54, %v729_v4 }
 0x207   : > { %314 = vst [vmem:[%s242_s29 + $0x10] sm:$0xff] %v310_v55  ;;  %315 = vst [vmem:[%s242_s29 + $0x18] sm:$0xff] %v311_v56 }
 0x208   : > { %515 = shalt.err (!%p512_p2)
}
 0x209   : > { %s516_s11 = scalar_lea.hbm %s768_s25, 512  ;;  %s520_s26 = scalar_lea.hbm %s819_s5, 1024 }
 0x20a   : > { %p517_p4 = scmp.ne.s32.totalorder %s768_s25, %s516_s11  ;;  %p521_p9 = scmp.lt.u32.totalorder %s768_s25, %s819_s5 }
 0x20b   : > { %p522_p1 = scmp.lt.u32.totalorder %s520_s26, %s516_s11  ;;  %p524_p6 = scmp.lt.u32.totalorder %s516_s11, %s768_s25 }
 0x20c   : > { %p518_p5 = pnand %p517_p4, %p826_p11 }
 0x20d   : > { %p523_p3 = por %p522_p1, %p521_p9 }
 0x20e   : > { %p519_p7 = pneg %p518_p5 }
 0x20f   : > { %p525_p12 = por %p524_p6, %p523_p3 }
 0x211   : > { %p526_p13 = pnand %p525_p12, %p519_p7 }
 0x213   : > { %529 = shalt.err (!%p526_p13)
}
 0x214   : > { %s575_s14 = smov 256   ;;  %s576_s15 = smov 16  }
 0x215   : > { %421 = dma.vmem_to_hbm [thread:$0]  (%p826_p11), %s763_s12, 512, %s768_s25, %s317_s22, %s575_s14, %s575_s14, %s576_s15  }
 0x216 PF: > { %s345_s16 = sand.u32 1, %s556_s18   ;;  %p827_p8 = scmp.ne.s32.totalorder %s824_s6, 0 }
 0x217   : > { %p828_p10 = scmp.ge.s32.totalorder %s568_s21, 2  ;;  %s346_s8 = scalar_lea.sflag [#allocation4], %s345_s16 }
 0x219   : > { %p428_p0 = pnand %p828_p10, %p827_p8 }
 0x21b   : > { %551 = dma.done.wait (!%p428_p0), %s346_s8, 512  }
 0x21c   : > { %553 = vsyncadd (!%p428_p0), %s346_s8, 4294966784  ;;  %p18_p2 = scmp.ge.s32.totalorder %s632_s24, 4   ;;  %s829_s18 = smov %s560_s19 }
 0x21d   : > { %s830_s19 = smov %s564_s20  ;;  %s831_s20 = smov %s644_s27 }
 0x21e   : > { %s832_s21 = smov %s632_s24  ;;  %20 = sbr.rel (!%p18_p2) target bundleno = 5 (0x5), region = 85 }
 0x225   :  { %351 = vsyncpa [#allocation3], 1 }
 0x226   :  { %353 = vsyncpa [#allocation3 + $0x1], 1 }
 0x227   :  { %354 = vsyncpa [#allocation4], 1 }
 0x228   :  { %356 = vsyncpa [#allocation4 + $0x1], 1 }

</bundles_post_ra>
